<compile_context>
chip_gen: v5e
topology: v5e:2x2
jax: 0.10.0
libtpu: 0.0.40
codegen_flags: <defaults>
</compile_context>

<pallas_src>
import functools

import jax
import jax.numpy as jnp
from jax import lax
from jax.experimental import pallas as pl
from jax.experimental.pallas import tpu as pltpu

FORGET_BIAS = 1.0


def _lstm_chunk_kernel(x_ref, w_ref, b_ref, c0_ref, m0_ref, out_ref,
                       c_sc, m_sc, *, input_size, chunk):
    """Runs `chunk` LSTM steps per grid iteration; grid axis 0 walks time chunks.

    x_ref  : [TT, B, I]   current time-chunk of inputs (streamed per grid step)
    w_ref  : [I+H, 4H]    fused transposed weight (VMEM-resident, index (0,0))
    b_ref  : [1, 4H]      bias with forget_bias pre-folded into the f segment
    c0/m0  : [B, H]       initial state (read only at the first grid step)
    out    : [B, 2H]      packed (c | m) final state (written only at the last)
    c_sc/m_sc : [B, H]    f32 VMEM scratch carrying the state across grid steps
    """
    t = pl.program_id(0)
    B, H = c_sc.shape
    I = input_size

    @pl.when(t == 0)
    def _():
        c_sc[...] = c0_ref[...]
        m_sc[...] = m0_ref[...]

    # Hoisted per-chunk loads: keep broadcasts / weight-slab loads out of the
    # unrolled inner time loop.
    mxu_dtype = w_ref.dtype
    w_x = w_ref[0:I, :]                                    # [I, 4H]  (sublane-aligned)
    w_m = w_ref[I:I + H, :]                                # [H, 4H]
    bias_full = jnp.broadcast_to(b_ref[...], (B, 4 * H))   # [B, 4H]

    def step(tt, carry):
        c_p, m_p = carry
        x = x_ref[tt]                                      # [B, I]
        # gates = [x, m_p] @ W^T + b, as two dots against static sublane
        # slices of the resident fused weight (no in-kernel lane concat).
        gates = (
            jnp.dot(x.astype(mxu_dtype), w_x,
                    preferred_element_type=jnp.float32)
            + jnp.dot(m_p.astype(mxu_dtype), w_m,
                      preferred_element_type=jnp.float32)
            + bias_full
        )                                                  # [B, 4H] f32
        # One EUP sigmoid + one EUP tanh over the whole slab (single vreg at
        # these shapes); gate extraction is then plain static lane slicing.
        sg = jax.nn.sigmoid(gates)
        tg = jnp.tanh(gates)
        i_s = sg[:, 0 * H:1 * H]
        f_s = sg[:, 2 * H:3 * H]          # forget_bias already folded into bias
        o_s = sg[:, 3 * H:4 * H]
        j_t = tg[:, 1 * H:2 * H]
        c = f_s * c_p + i_s * j_t
        m = o_s * jnp.tanh(c)
        return c, m

    c, m = lax.fori_loop(0, chunk, step, (c_sc[...], m_sc[...]), unroll=True)
    c_sc[...] = c
    m_sc[...] = m

    @pl.when(t == pl.num_programs(0) - 1)
    def _():
        # Single packed [B, 2H] store (one vst instead of two masked stores).
        out_ref[...] = jnp.concatenate([c, m], axis=1).astype(out_ref.dtype)


def prepare_lstm_params(weight, bias, forget_bias=FORGET_BIAS,
                        param_dtype=jnp.float32):
    """Hoist the per-call weight prep out of the hot path (do this ONCE).

    weight: [4H, I+H] (PyTorch Parameter layout), bias: [4H].
    Returns (w_t [I+H, 4H], b2d [1, 4H]) with forget_bias folded into the
    forget-gate bias segment.  Keep param_dtype=f32 at small sizes; only use
    bf16 when the resident weight pressures v7x VMEM or the batch tile >= 256.
    """
    four_h = weight.shape[0]
    H = four_h // 4
    w_t = jnp.transpose(weight).astype(param_dtype)          # [I+H, 4H]
    b = bias.astype(jnp.float32).at[2 * H:3 * H].add(forget_bias)
    b2d = b.reshape(1, four_h)                               # [1, 4H]
    return w_t, b2d


def _largest_divisor_leq(n, cap):
    cap = max(1, min(cap, n))
    for d in range(cap, 0, -1):
        if n % d == 0:
            return d
    return 1


def my_lstm_cell_seq(xs, hx, w_t, b2d, time_chunk=8):
    """Run the LSTM recurrence over a whole sequence in ONE pallas_call.

    xs: [T, B, I]; hx = (c0 [B, H], m0 [B, H]); w_t: [I+H, 4H]; b2d: [1, 4H].
    `time_chunk` time steps are executed per grid iteration (fully unrolled
    inside the kernel); the grid walks the sequence in chunks.
    Returns the final state (m_T, c_T), matching repeated MyLSTMCell.forward.
    """
    c0, m0 = hx
    T, B, I = xs.shape
    H = m0.shape[-1]

    tc = _largest_divisor_leq(T, time_chunk)   # static chunk that tiles T
    n_chunks = T // tc

    kernel = functools.partial(_lstm_chunk_kernel, input_size=I, chunk=tc)

    packed = pl.pallas_call(
        kernel,
        out_shape=jax.ShapeDtypeStruct((B, 2 * H), jnp.float32),
        grid_spec=pltpu.PrefetchScalarGridSpec(
            num_scalar_prefetch=0,
            grid=(n_chunks,),
            in_specs=[
                pl.BlockSpec((tc, B, I), lambda t: (t, 0, 0)),    # x chunk streamed
                pl.BlockSpec((I + H, 4 * H), lambda t: (0, 0)),   # W resident
                pl.BlockSpec((1, 4 * H), lambda t: (0, 0)),       # bias resident
                pl.BlockSpec((B, H), lambda t: (0, 0)),           # c0 resident
                pl.BlockSpec((B, H), lambda t: (0, 0)),           # m0 resident
            ],
            out_specs=pl.BlockSpec((B, 2 * H), lambda t: (0, 0)), # t-invariant
            scratch_shapes=[
                pltpu.VMEM((B, H), jnp.float32),   # c carry
                pltpu.VMEM((B, H), jnp.float32),   # m carry
            ],
        ),
        compiler_params=pltpu.CompilerParams(
            # Time axis is a true recurrence -> must stay sequential.  If B
            # grows large, add a leading B-tile grid axis marked "parallel"
            # (with b threaded into the x/c0/m0/out index_maps) to shard
            # across v7x's two TensorCores and fill the MXU.
            dimension_semantics=("arbitrary",),
            # Explicit, v7x-safe VMEM budget (usage here is only ~hundreds of KiB).
            vmem_limit_bytes=32 * 1024 * 1024,
        ),
    )(xs, w_t, b2d, c0, m0)

    c = packed[:, :H]
    m = packed[:, H:]
    return m, c


def my_lstm_cell(inputs, hx, weight, bias, forget_bias=FORGET_BIAS):
    """JAX/Pallas equivalent of MyLSTMCell.forward (single step).

    inputs: [B, I]; hx = (c_p, m_p); weight: [4H, I+H]; bias: [4H].
    Returns (m, c) exactly like the PyTorch module.  For a recurrent driver,
    prefer prepare_lstm_params(...) once + my_lstm_cell_seq(...) directly.
    """
    c_p, m_p = hx
    w_t, b2d = prepare_lstm_params(weight, bias, forget_bias)
    return my_lstm_cell_seq(inputs[None], (c_p, m_p), w_t, b2d, time_chunk=1)


def _reference_step(x, hx, weight, bias, forget_bias=FORGET_BIAS):
    # Pure-JAX reference mirroring the PyTorch forward.
    c_p, m_p = hx
    xh = jnp.concatenate([x, m_p], axis=1)
    lstm_matrix = xh @ weight.T + bias
    i, j, f, o = jnp.split(lstm_matrix, 4, axis=1)
    c = jax.nn.sigmoid(f + forget_bias) * c_p + jax.nn.sigmoid(i) * jnp.tanh(j)
    m = jax.nn.sigmoid(o) * jnp.tanh(c)
    return m, c


if __name__ == "__main__":
    B, I, H, T = 8, 16, 32, 16

    key = jax.random.PRNGKey(0)
    k_w, k_x, k_c, k_m = jax.random.split(key, 4)

    # Deterministic parameter init matching reset_parameters():
    #   weight: xavier_uniform_ over shape (4H, I+H); bias: zeros.
    fan_in, fan_out = I + H, 4 * H
    bound = (6.0 / (fan_in + fan_out)) ** 0.5
    weight = jax.random.uniform(k_w, (4 * H, I + H), jnp.float32,
                                minval=-bound, maxval=bound)
    bias = jnp.zeros((4 * H,), jnp.float32)

    xs = jax.random.normal(k_x, (T, B, I), jnp.float32)
    c0 = jax.random.normal(k_c, (B, H), jnp.float32)
    m0 = jax.random.normal(k_m, (B, H), jnp.float32)

    # --- single step: module-equivalent forward ---
    m1, c1 = my_lstm_cell(xs[0], (c0, m0), weight, bias)
    jax.block_until_ready((m1, c1))
    m1_ref, c1_ref = _reference_step(xs[0], (c0, m0), weight, bias)
    assert jnp.allclose(m1, m1_ref, atol=1e-5, rtol=1e-5)
    assert jnp.allclose(c1, c1_ref, atol=1e-5, rtol=1e-5)

    # --- T-step recurrence: 8 steps per grid iteration, 2 grid steps ---
    w_t, b2d = prepare_lstm_params(weight, bias)   # hoisted, done once
    mT, cT = my_lstm_cell_seq(xs, (c0, m0), w_t, b2d, time_chunk=8)
    jax.block_until_ready((mT, cT))

    c_r, m_r = c0, m0
    for t in range(T):
        m_r, c_r = _reference_step(xs[t], (c_r, m_r), weight, bias)
    assert jnp.allclose(mT, m_r, atol=1e-4, rtol=1e-4)
    assert jnp.allclose(cT, c_r, atol=1e-4, rtol=1e-4)

    # --- non-divisible requested chunk falls back to a divisor of T ---
    mT2, cT2 = my_lstm_cell_seq(xs, (c0, m0), w_t, b2d, time_chunk=5)  # -> tc=4
    jax.block_until_ready((mT2, cT2))
    assert jnp.allclose(mT2, m_r, atol=1e-4, rtol=1e-4)
    assert jnp.allclose(cT2, c_r, atol=1e-4, rtol=1e-4)

    print("KERNEL_OK")
</pallas_src>

<mosaic_0001>
module attributes {stable_mosaic.version = 11 : i64} {
  func.func @_lstm_chunk_kernel(%arg0: i32, %arg1: memref<1x8x16xf32, #tpu.memory_space<vmem>>, %arg2: memref<48x128xf32, #tpu.memory_space<vmem>>, %arg3: memref<1x128xf32, #tpu.memory_space<vmem>>, %arg4: memref<8x32xf32, #tpu.memory_space<vmem>>, %arg5: memref<8x32xf32, #tpu.memory_space<vmem>>, %arg6: memref<8x64xf32, #tpu.memory_space<vmem>>, %arg7: memref<8x32xf32, #tpu.memory_space<vmem>>, %arg8: memref<8x32xf32, #tpu.memory_space<vmem>>) attributes {dimension_semantics = [#tpu.dimension_semantics<arbitrary>], iteration_bounds = array<i64: 1>, scalar_prefetch = 0 : i64, scratch_operands = 2 : i64, tpu.core_type = #tpu.core_type<tc>, window_params = [{transform_indices = @transform_0, window_bounds = array<i64: 1, 8, 16>}, {pipeline_mode = #tpu.pipeline_mode<synchronous>, transform_indices = @transform_1, window_bounds = array<i64: 48, 128>}, {pipeline_mode = #tpu.pipeline_mode<synchronous>, transform_indices = @transform_2, window_bounds = array<i64: 1, 128>}, {pipeline_mode = #tpu.pipeline_mode<synchronous>, transform_indices = @transform_3, window_bounds = array<i64: 8, 32>}, {pipeline_mode = #tpu.pipeline_mode<synchronous>, transform_indices = @transform_4, window_bounds = array<i64: 8, 32>}, {pipeline_mode = #tpu.pipeline_mode<synchronous>, transform_indices = @transform_5, window_bounds = array<i64: 8, 64>}]} {
    %c0_i32 = arith.constant 0 : i32
    %0 = arith.cmpi eq, %arg0, %c0_i32 : i32
    %1 = arith.extui %0 : i1 to i32
    %c0_i32_0 = arith.constant 0 : i32
    %2 = arith.cmpi ne, %1, %c0_i32_0 : i32
    scf.if %2 {
      %c0_20 = arith.constant 0 : index
      %c0_21 = arith.constant 0 : index
      %37 = vector.load %arg4[%c0_20, %c0_21] : memref<8x32xf32, #tpu.memory_space<vmem>>, vector<8x32xf32>
      %c0_22 = arith.constant 0 : index
      %c0_23 = arith.constant 0 : index
      %38 = vector.load %arg7[%c0_22, %c0_23] : memref<8x32xf32, #tpu.memory_space<vmem>>, vector<8x32xf32>
      tpu.vector_store %arg7[%c0_22, %c0_23], %37 {strides = array<i32>} : memref<8x32xf32, #tpu.memory_space<vmem>>, vector<8x32xf32>,
      %c0_24 = arith.constant 0 : index
      %c0_25 = arith.constant 0 : index
      %39 = vector.load %arg5[%c0_24, %c0_25] : memref<8x32xf32, #tpu.memory_space<vmem>>, vector<8x32xf32>
      %c0_26 = arith.constant 0 : index
      %c0_27 = arith.constant 0 : index
      %40 = vector.load %arg8[%c0_26, %c0_27] : memref<8x32xf32, #tpu.memory_space<vmem>>, vector<8x32xf32>
      tpu.vector_store %arg8[%c0_26, %c0_27], %39 {strides = array<i32>} : memref<8x32xf32, #tpu.memory_space<vmem>>, vector<8x32xf32>,
    } else {
    }
    %c0 = arith.constant 0 : index
    %c0_1 = arith.constant 0 : index
    %3 = vector.load %arg2[%c0, %c0_1] : memref<48x128xf32, #tpu.memory_space<vmem>>, vector<16x128xf32>
    %c16 = arith.constant 16 : index
    %c0_2 = arith.constant 0 : index
    %4 = vector.load %arg2[%c16, %c0_2] : memref<48x128xf32, #tpu.memory_space<vmem>>, vector<32x128xf32>
    %c0_3 = arith.constant 0 : index
    %c0_4 = arith.constant 0 : index
    %5 = vector.load %arg3[%c0_3, %c0_4] : memref<1x128xf32, #tpu.memory_space<vmem>>, vector<1x128xf32>
    %6 = vector.shape_cast %5 : vector<1x128xf32> to vector<1x128xf32>
    %7 = vector.broadcast %6 : vector<1x128xf32> to vector<8x128xf32>
    %c0_5 = arith.constant 0 : index
    %c0_6 = arith.constant 0 : index
    %8 = vector.load %arg7[%c0_5, %c0_6] : memref<8x32xf32, #tpu.memory_space<vmem>>, vector<8x32xf32>
    %c0_7 = arith.constant 0 : index
    %c0_8 = arith.constant 0 : index
    %9 = vector.load %arg8[%c0_7, %c0_8] : memref<8x32xf32, #tpu.memory_space<vmem>>, vector<8x32xf32>
    %c0_i32_9 = arith.constant 0 : i32
    %10 = arith.index_cast %c0_i32_9 : i32 to index
    %c0_10 = arith.constant 0 : index
    %c0_11 = arith.constant 0 : index
    %11 = vector.load %arg1[%10, %c0_10, %c0_11] : memref<1x8x16xf32, #tpu.memory_space<vmem>>, vector<1x8x16xf32>
    %12 = vector.shape_cast %11 : vector<1x8x16xf32> to vector<8x16xf32>
    %cst = arith.constant dense<0.000000e+00> : vector<8x128xf32>
    %13 = tpu.matmul %12, %3, %cst {dimension_numbers = #tpu.dot_dimension_numbers<[1], [0], [0], [1], [0, 0, 1, 1], [], []>} : vector<8x16xf32>, vector<16x128xf32>, vector<8x128xf32> -> vector<8x128xf32>
    %cst_12 = arith.constant dense<0.000000e+00> : vector<8x128xf32>
    %14 = tpu.matmul %9, %4, %cst_12 {dimension_numbers = #tpu.dot_dimension_numbers<[1], [0], [0], [1], [0, 0, 1, 1], [], []>} : vector<8x32xf32>, vector<32x128xf32>, vector<8x128xf32> -> vector<8x128xf32>
    %15 = arith.addf %13, %14 : vector<8x128xf32>
    %16 = arith.addf %15, %7 : vector<8x128xf32>
    %17 = arith.negf %16 : vector<8x128xf32>
    %18 = math.exp %17 : vector<8x128xf32>
    %cst_13 = arith.constant 1.000000e+00 : f32
    %19 = vector.broadcast %cst_13 : f32 to vector<8x128xf32>
    %20 = arith.addf %19, %18 : vector<8x128xf32>
    %21 = arith.divf %19, %20 : vector<8x128xf32>
    %22 = math.tanh %16 : vector<8x128xf32>
    %23 = vector.extract_strided_slice %21 {offsets = [0, 0], sizes = [8, 32], strides = [1, 1]} : vector<8x128xf32> to vector<8x32xf32>
    %24 = vector.extract_strided_slice %21 {offsets = [0, 64], sizes = [8, 32], strides = [1, 1]} : vector<8x128xf32> to vector<8x32xf32>
    %25 = vector.extract_strided_slice %21 {offsets = [0, 96], sizes = [8, 32], strides = [1, 1]} : vector<8x128xf32> to vector<8x32xf32>
    %26 = vector.extract_strided_slice %22 {offsets = [0, 32], sizes = [8, 32], strides = [1, 1]} : vector<8x128xf32> to vector<8x32xf32>
    %27 = arith.mulf %24, %8 : vector<8x32xf32>
    %28 = arith.mulf %23, %26 : vector<8x32xf32>
    %29 = arith.addf %27, %28 : vector<8x32xf32>
    %30 = math.tanh %29 : vector<8x32xf32>
    %31 = arith.mulf %25, %30 : vector<8x32xf32>
    %c1_i32 = arith.constant 1 : i32
    %c0_14 = arith.constant 0 : index
    %c0_15 = arith.constant 0 : index
    %32 = vector.load %arg7[%c0_14, %c0_15] : memref<8x32xf32, #tpu.memory_space<vmem>>, vector<8x32xf32>
    tpu.vector_store %arg7[%c0_14, %c0_15], %29 {strides = array<i32>} : memref<8x32xf32, #tpu.memory_space<vmem>>, vector<8x32xf32>,
    %c0_16 = arith.constant 0 : index
    %c0_17 = arith.constant 0 : index
    %33 = vector.load %arg8[%c0_16, %c0_17] : memref<8x32xf32, #tpu.memory_space<vmem>>, vector<8x32xf32>
    tpu.vector_store %arg8[%c0_16, %c0_17], %31 {strides = array<i32>} : memref<8x32xf32, #tpu.memory_space<vmem>>, vector<8x32xf32>,
    %c0_i32_18 = arith.constant 0 : i32
    %34 = arith.cmpi eq, %arg0, %c0_i32_18 : i32
    %35 = arith.extui %34 : i1 to i32
    %c0_i32_19 = arith.constant 0 : i32
    %36 = arith.cmpi ne, %35, %c0_i32_19 : i32
    scf.if %36 {
      %37 = tpu.concatenate %29, %31 in 1 : vector<8x32xf32>, vector<8x32xf32> -> vector<8x64xf32>
      %c0_20 = arith.constant 0 : index
      %c0_21 = arith.constant 0 : index
      %38 = vector.load %arg6[%c0_20, %c0_21] : memref<8x64xf32, #tpu.memory_space<vmem>>, vector<8x64xf32>
      tpu.vector_store %arg6[%c0_20, %c0_21], %37 {strides = array<i32>} : memref<8x64xf32, #tpu.memory_space<vmem>>, vector<8x64xf32>,
    } else {
    }
    return
  }
  func.func @transform_0(%arg0: i32) -> (i32, i32, i32) {
    %c0_i32 = arith.constant 0 : i32
    %c0_i32_0 = arith.constant 0 : i32
    %c0_i32_1 = arith.constant 0 : i32
    return %arg0, %c0_i32, %c0_i32_0 : i32, i32, i32
  }
  func.func @transform_1(%arg0: i32) -> (i32, i32) {
    %c0_i32 = arith.constant 0 : i32
    %c0_i32_0 = arith.constant 0 : i32
    %c0_i32_1 = arith.constant 0 : i32
    return %c0_i32, %c0_i32_0 : i32, i32
  }
  func.func @transform_2(%arg0: i32) -> (i32, i32) {
    %c0_i32 = arith.constant 0 : i32
    %c0_i32_0 = arith.constant 0 : i32
    %c0_i32_1 = arith.constant 0 : i32
    return %c0_i32, %c0_i32_0 : i32, i32
  }
  func.func @transform_3(%arg0: i32) -> (i32, i32) {
    %c0_i32 = arith.constant 0 : i32
    %c0_i32_0 = arith.constant 0 : i32
    %c0_i32_1 = arith.constant 0 : i32
    return %c0_i32, %c0_i32_0 : i32, i32
  }
  func.func @transform_4(%arg0: i32) -> (i32, i32) {
    %c0_i32 = arith.constant 0 : i32
    %c0_i32_0 = arith.constant 0 : i32
    %c0_i32_1 = arith.constant 0 : i32
    return %c0_i32, %c0_i32_0 : i32, i32
  }
  func.func @transform_5(%arg0: i32) -> (i32, i32) {
    %c0_i32 = arith.constant 0 : i32
    %c0_i32_0 = arith.constant 0 : i32
    %c0_i32_1 = arith.constant 0 : i32
    return %c0_i32, %c0_i32_0 : i32, i32
  }
}

</mosaic_0001>

<bundles_post_ra>
// kernel: tpu_custom_call.1
= control target key start
LH: loop header
LB: loop body
LE: loop exit
PB: predicated region body
PF: predicated region fallthrough
CT: control target
= control target key end

     0   :  { %10 = vsyncpa [#allocation5], 0  ;;  %s446_s0 = inlined_call_operand.hbm [shape: f32[1,8,16], index: 0, kind: input, shape index: {}]   ;;  %s447_s1 = inlined_call_operand.hbm [shape: f32[48,128], index: 1, kind: input, shape index: {}]   ;;  %s448_s2 = inlined_call_operand.vmem [shape: f32[1,128], index: 2, kind: input, shape index: {}]   ;;  %s449_s3 = inlined_call_operand.hbm [shape: f32[8,32], index: 3, kind: input, shape index: {}]   ;;  %s450_s4 = inlined_call_operand.hbm [shape: f32[8,32], index: 4, kind: input, shape index: {}]   ;;  %s451_s5 = inlined_call_operand.hbm [shape: f32[8,64], index: 5, kind: output, shape index: {}]  }
   0x1   :  { %11 = vsyncpa [#allocation8], 0 }
   0x2   :  { %12 = vsyncpa [#allocation11], 0  ;;  %s29_s20 = sshll.u32 %s447_s1, 4  ;;  %s30_s20 = int_to_ptr.hbm [resolvable:$true] %s29_s20 }
   0x3   :  { %13 = vsyncpa [#allocation6], 0  ;;  %s378_s21 = smov [#allocation7]   ;;  %s19_s25 = sshll.u32 %s446_s0, 4  ;;  %s20_s25 = int_to_ptr.hbm [resolvable:$true] %s19_s25 }
   0x4   :  { %s31_s22 = sshll.u32 %s378_s21, 4  ;;  %s379_s26 = smov 128   ;;  %s32_s22 = int_to_ptr.vmem [resolvable:$true] %s31_s22 }
   0x5   :  { %s380_s27 = smov 8   ;;  %s381_s28 = smov [#allocation4]  }
   0x6   :  { %37 = dma.hbm_to_vmem [thread:$0]  %s30_s20, 768, %s32_s22, [#allocation8], %s379_s26, %s379_s26, %s380_s27  }
   0x7   :  { %s21_s29 = sshll.u32 %s381_s28, 4  ;;  %s45_s7 = sshll.u32 %s449_s3, 4  ;;  %s22_s29 = int_to_ptr.vmem [resolvable:$true] %s21_s29  ;;  %s46_s7 = int_to_ptr.hbm [resolvable:$true] %s45_s7 }
   0x8   :  { %24 = dma.hbm_to_vmem [thread:$0]  %s20_s25, 128, %s22_s29, [#allocation5]  }
   0x9   :  { %s56_s9 = sshll.u32 %s450_s4, 4  ;;  %s382_s10 = smov [#allocation9]   ;;  %s57_s9 = int_to_ptr.hbm [resolvable:$true] %s56_s9 }
   0xa   :  { %s47_s11 = sshll.u32 %s382_s10, 4  ;;  %s383_s0 = smov [#allocation10]   ;;  %s48_s11 = int_to_ptr.vmem [resolvable:$true] %s47_s11 }
   0xb   :  { %50 = dma.hbm_to_vmem [thread:$0]  %s46_s7, 128, %s48_s11, [#allocation8]  }
   0xc   :  { %s58_s12 = sshll.u32 %s383_s0, 4  ;;  %s59_s12 = int_to_ptr.vmem [resolvable:$true] %s58_s12 }
   0xd   :  { %61 = dma.hbm_to_vmem [thread:$0]  %s57_s9, 128, %s59_s12, [#allocation11]  }
   0xe   :  { %370 = dma.done.wait [#allocation5], 128  }
   0xf   :  { %371 = vsyncadd [#allocation5], 4294967168 }
  0x10   :  { %372 = dma.done.wait [#allocation8], 896  }
  0x11   :  { %373 = vsyncadd [#allocation8], 4294966400 }
  0x12   :  { %374 = dma.done.wait [#allocation11], 128  }
  0x13   :  { %375 = vsyncadd [#allocation11], 4294967168  ;;  %v92_v0 = vld [vmem:[#allocation7 + $0x28] sm:$0xff]  ;;  %v91_v1 = vld [vmem:[#allocation7 + $0x20] sm:$0xff]  ;;  %vm83_vm0 = vcmask 261120   ;;  %vm124_vm1 = vcmask 130048  }
  0x14   :  { %116 = vmatpush.msra.mxu0 %v92_v0  ;;  %v90_v2 = vld [vmem:[#allocation7 + $0x18] sm:$0xff]  ;;  %v88_v3 = vld [vmem:[#allocation7 + $0x8] sm:$0xff]  ;;  %v87_v4 = vld [vmem:[#allocation7] sm:$0xff]  ;;  %s384_s13 = smov 96   ;;  %s385_s14 = smov 64   ;;  %vm207_vm6 = vcmask 523264  }
  0x15   :  { %142 = vmatpush.msra.mxu1 %v88_v3  ;;  %v82_v5 = vld [vmem:[#allocation9] sm:$0xff]  ;;  %v85_v6 = vld [vmem:[#allocation10] sm:$0xff]  ;;  %v241_v11 = vld [vmem:[%s448_s2] ss:$0 sm:$0xff]  ;;  %s386_s2 = smov 32   ;;  %s387_s15 = smov [#allocation12]  }
  0x16   :  { %v99_v7 = vld [vmem:[#allocation4] sm:$0xff]  ;;  %117 = vmatpush.msra.mxu0 %v91_v1  ;;  %84 = vst.msk [vmem:[#allocation2] sm:$0xff] %vm83_vm0, %v82_v5  ;;  %v89_v8 = vld [vmem:[#allocation7 + $0x10] sm:$0xff]  ;;  %s214_s16 = sshll.u32 %s387_s15, 4  ;;  %s216_s19 = sshll.u32 %s451_s5, 4  ;;  %s215_s16 = int_to_ptr.vmem [resolvable:$true] %s214_s16  ;;  %s217_s19 = int_to_ptr.hbm [resolvable:$true] %s216_s19 }
  0x17   :  { %143 = vmatpush.msra.mxu1 %v87_v4  ;;  %86 = vst.msk [vmem:[#allocation3] sm:$0xff] %vm83_vm0, %v85_v6 }
  0x18   :  { %118 = vmatpush.msra.mxu0 %v90_v2  ;;  %229 = vmatmul.msk.f32.vlgmr.msra.gmra.mxu1 %vm124_vm1, %v99_v7 }
  0x1a   :  { %119 = vmatpush.msra.mxu0 %v89_v8 }
  0x1d   :  { %v97_v16 = vld [vmem:[#allocation2] sm:$0xff] }
  0x1e   :  { %v98_v9 = vld [vmem:[#allocation3] sm:$0xff] }
  0x1f   :  { %228 = vmatmul.msk.f32.vlgmr.msra.gmra.mxu0 %vm83_vm0, %v98_v9 }
  0x95   :  { %v145_v10 = vpop.f32.mrf.mxu1 }
  0x9c   :  { %v121_v12 = vpop.f32.mrf.mxu0 }
  0x9d   :  { %v146_v13 = vadd.f32 %v145_v10, %v121_v12 }
  0x9f   :  { %v148_v14 = vadd.f32 %v241_v11, %v146_v13 }
  0xa1   :  { %242 = vtanh.f32 %v148_v14  ;;  %v230_v17 = vmul.f32 -1.442695, %v148_v14 }
  0xa3   :  { %244 = vpow2.f32 %v230_v17 }
  0xa7   :  { %v243_v15 = vpop.eup %242 }
  0xa8   :  { %175 = vrot.lane.b32.xlu0 %v243_v15, %s384_s13 }
  0xa9   :  { %v245_v18 = vpop.eup %244 }
  0xaa   :  { %v152_v19 = vadd.f32 1.0, %v245_v18 }
  0xac   :  { %246 = vrcp.f32 %v152_v19  ;;  %v164_v25 = vand.u32 2147483648, %v152_v19  ;;  %vm158_vm3 = vweird.f32 %v152_v19  ;;  %v162_v26 = vand.u32 2147483647, %v152_v19 }
  0xae   :  { %v165_v28 = vor.u32 1.1754944e-38, %v164_v25  ;;  %vm163_vm5 = vcmp.eq.f32.partialorder %v162_v26, 8.507059e+37 }
  0xb0   :  { %170 = vrot.lane.b32.xlu0 %v97_v16, %s385_s14 }
  0xb2   :  { %v247_v20 = vpop.eup %246 }
  0xb3   :  { %v154_v21 = vmul.f32 %v247_v20, %v152_v19  ;;  %vm159_vm2 = vweird.f32 %v247_v20 }
  0xb4   :  { %vm160_vm4 = vmor %vm158_vm3, %vm159_vm2 }
  0xb5   :  { %v155_v22 = vsub.f32 1.0, %v154_v21 }
  0xb7   :  { %v156_v23 = vmul.f32 %v247_v20, %v155_v22 }
  0xb9   :  { %v157_v24 = vadd.f32 %v247_v20, %v156_v23 }
  0xbb   :  { %v161_v27 = vsel %vm160_vm4, %v247_v20, %v157_v24 }
  0xbc   :  { %v166_v30 = vsel %vm163_vm5, %v165_v28, %v161_v27 }
 0x11a   :  { %v176_v29 = vpop.permute.xlu0 %175 }
 0x11b   :  { %v178_v31 = vmul.f32 %v176_v29, %v166_v30 }
 0x11d   :  { %180 = vrot.lane.b32.xlu1 %v178_v31, %s385_s14 }
 0x122   :  { %v171_v32 = vpop.permute.xlu0 %170 }
 0x123   :  { %v173_v33 = vmul.f32 %v171_v32, %v166_v30 }
 0x18f   :  { %v181_v34 = vpop.permute.xlu1 %180 }
 0x190   :  { %v183_v35 = vadd.f32 %v181_v34, %v173_v33 }
 0x192   :  { %248 = vtanh.f32 %v183_v35  ;;  %191 = vrot.lane.b32.xlu2 %v183_v35, %s385_s14 }
 0x198   :  { %v249_v36 = vpop.eup %248 }
 0x199   :  { %186 = vrot.lane.b32.xlu1 %v249_v36, %s386_s2 }
 0x1ec   :  { %v192_v37 = vpop.permute.xlu2 %191 }
 0x1ed   :  { %194 = vst.msk [vmem:[#allocation2] sm:$0xff] %vm83_vm0, %v192_v37 }
 0x20b   :  { %v187_v38 = vpop.permute.xlu1 %186 }
 0x20c   :  { %v189_v39 = vmul.f32 %v187_v38, %v166_v30 }
 0x20e   :  { %196 = vrot.lane.b32.xlu0 %v189_v39, %s386_s2  ;;  %203 = vrot.lane.b32.xlu2 %v189_v39, %s385_s14 }
 0x268   :  { %v204_v40 = vpop.permute.xlu2 %203 }
 0x269   :  { %v206_v41 = vsel %vm83_vm0, %v192_v37, %v204_v40 }
 0x26a   :  { %208 = vst.msk [vmem:[#allocation12] sm:$0xff] %vm207_vm6, %v206_v41 }
 0x26b   :  { %219 = dma.vmem_to_hbm [thread:$0]  %s215_s16, 128, %s217_s19, [#allocation6]  }
 0x280   :  { %v197_v42 = vpop.permute.xlu0 %196 }
 0x281   :  { %199 = vst.msk [vmem:[#allocation3] sm:$0xff] %vm83_vm0, %v197_v42 }
 0x282   :  { %376 = dma.done.wait [#allocation6], 128  }
 0x283   :  { %377 = vsyncadd [#allocation6], 4294967168 }
 0x284   :  { %224 = vsyncpa [#allocation5], 1 }
 0x285   :  { %225 = vsyncpa [#allocation8], 1 }
 0x286   :  { %226 = vsyncpa [#allocation11], 1 }
 0x287   :  { %227 = vsyncpa [#allocation6], 1 }

</bundles_post_ra>
